<compile_context>
chip_gen: v7x
topology: tpu7x:2x2x1
jax: 0.10.0
libtpu: 0.0.40
codegen_flags: <defaults>
</compile_context>

<pallas_src>
import jax
import jax.numpy as jnp
from jax.experimental import pallas as pl
from jax.experimental.pallas import tpu as pltpu


# ---------------------------------------------------------------------------
# Helpers
# ---------------------------------------------------------------------------
def _round_up(n, m):
    return ((n + m - 1) // m) * m


def _block_diag(mats):
    rows = sum(m.shape[0] for m in mats)
    cols = sum(m.shape[1] for m in mats)
    out = jnp.zeros((rows, cols), jnp.float32)
    r = c = 0
    for m in mats:
        out = out.at[r:r + m.shape[0], c:c + m.shape[1]].set(m.astype(jnp.float32))
        r += m.shape[0]
        c += m.shape[1]
    return out


# ---------------------------------------------------------------------------
# One-time host-side packing of a tower's parameters into a single VMEM slab.
# Slab layout (rows):
#   [0            .. d_in_pad)        : WA = [W1_cat | GW_cat]        (lanes 0..La)
#   [d_in_pad     .. d_in_pad+8)      : bias rows: bA | b2_cat | b3_cat (one row each)
#   [d_in_pad+8   .. +E*h1)           : W2 block-diagonal [E*h1, E*h2]
#   [..           .. +E*h2)           : W3 block-diagonal [E*h2, E*d_out]
# ---------------------------------------------------------------------------
def pack_tower(p, num_tasks):
    E, d_in, h1 = p["w1"].shape
    h2 = p["w2"].shape[-1]
    d_out = p["w3"].shape[-1]
    T = num_tasks
    d_in_pad = _round_up(d_in, 8)
    La = E * h1 + T * E
    lanes = _round_up(max(La, E * h2, E * d_out), 128)

    # Stage A: concatenated layer-1 + gate weights.
    w1c = jnp.transpose(p["w1"], (1, 0, 2)).reshape(d_in, E * h1)     # [d_in, E*h1]
    gwc = jnp.transpose(p["gate_w"], (1, 0, 2)).reshape(d_in, T * E)  # [d_in, T*E]
    wa = jnp.concatenate([w1c, gwc], axis=-1)                         # [d_in, La]
    wa = jnp.pad(wa, ((0, d_in_pad - d_in), (0, lanes - La)))

    ba = jnp.concatenate([p["b1"].reshape(E * h1), p["gate_b"].reshape(T * E)])
    ba = jnp.pad(ba, (0, lanes - La))

    # Block-diagonal layers 2/3.
    w2bd = _block_diag([p["w2"][e] for e in range(E)])                # [E*h1, E*h2]
    b2c = p["b2"].reshape(E * h2)
    w3bd = _block_diag([p["w3"][e] for e in range(E)])                # [E*h2, E*d_out]
    b3c = p["b3"].reshape(E * d_out)

    r_wa = 0
    r_b = d_in_pad
    r_w2 = d_in_pad + 8
    r_w3 = r_w2 + E * h1
    n_rows = r_w3 + E * h2                                            # multiple of 8

    slab = jnp.zeros((n_rows, lanes), jnp.float32)
    slab = slab.at[r_wa:r_wa + d_in_pad, :].set(wa)
    slab = slab.at[r_b, :].set(ba)
    slab = slab.at[r_b + 1, :E * h2].set(b2c)
    slab = slab.at[r_b + 2, :E * d_out].set(b3c)
    slab = slab.at[r_w2:r_w2 + E * h1, :E * h2].set(w2bd)
    slab = slab.at[r_w3:r_w3 + E * h2, :E * d_out].set(w3bd)

    layout = dict(E=E, T=T, h1=h1, h2=h2, d_out=d_out, d_in=d_in,
                  d_in_pad=d_in_pad, La=La, lanes=lanes,
                  r_wa=r_wa, r_b=r_b, r_w2=r_w2, r_w3=r_w3, n_rows=n_rows)
    return slab, layout


def pack_mmoe(user_params, item_params, num_tasks):
    slab_u, lay_u = pack_tower(user_params, num_tasks)
    slab_i, lay_i = pack_tower(item_params, num_tasks)
    return dict(slab_u=slab_u, layout_u=lay_u, slab_i=slab_i, layout_i=lay_i)


# ---------------------------------------------------------------------------
# Fused kernel: user MMoE tower + item MMoE tower + per-task dot-product logits.
# ---------------------------------------------------------------------------
def _make_fused_kernel(Lu, Li, out_w, batch):
    def tower(x, w_ref, L):
        E, T, h1, h2, d_out = L["E"], L["T"], L["h1"], L["h2"], L["d_out"]
        La = L["La"]

        # --- stage A: one matmul for layer-1 (all experts) AND all gate logits ---
        wa = w_ref[L["r_wa"]:L["r_wa"] + L["d_in_pad"], 0:La]
        ba = w_ref[L["r_b"]:L["r_b"] + 1, 0:La]
        act_a = jnp.dot(x, wa, preferred_element_type=jnp.float32) + ba     # [B, La]

        a1 = jnp.maximum(act_a[:, 0:E * h1], 0.0)                           # [B, E*h1]

        gates = []
        for t in range(T):
            lg = act_a[:, E * h1 + t * E: E * h1 + (t + 1) * E]             # [B, E]
            m = jnp.max(lg, axis=-1, keepdims=True)
            p = jnp.exp(lg - m)
            inv = pl.reciprocal(jnp.sum(p, axis=-1, keepdims=True), approx=True)
            gates.append(p * inv)                                           # [B, E]

        # --- stage B/C: block-diagonal expert layers 2 and 3 (one matmul each) ---
        # TODO(synk): dropout between expert layers omitted (inference / eval semantics).
        w2 = w_ref[L["r_w2"]:L["r_w2"] + E * h1, 0:E * h2]
        b2 = w_ref[L["r_b"] + 1:L["r_b"] + 2, 0:E * h2]
        a2 = jnp.maximum(jnp.dot(a1, w2, preferred_element_type=jnp.float32) + b2, 0.0)

        w3 = w_ref[L["r_w3"]:L["r_w3"] + E * h2, 0:E * d_out]
        b3 = w_ref[L["r_b"] + 2:L["r_b"] + 3, 0:E * d_out]
        oc = jnp.dot(a2, w3, preferred_element_type=jnp.float32) + b3       # [B, E*d_out]

        # --- gate-weighted mix per task, accumulated in registers ---
        embs = []
        for t in range(T):
            acc = gates[t][:, 0:1] * oc[:, 0:d_out]
            for e in range(1, E):
                acc = acc + gates[t][:, e:e + 1] * oc[:, e * d_out:(e + 1) * d_out]
            embs.append(acc)                                                # [B, d_out]
        return embs

    def kernel(ux_ref, ix_ref, uw_ref, iw_ref, out_ref):
        u = tower(ux_ref[...], uw_ref, Lu)
        v = tower(ix_ref[...], iw_ref, Li)
        T, d_out = Lu["T"], Lu["d_out"]

        logits = jnp.concatenate(
            [jnp.sum(u[t] * v[t], axis=-1, keepdims=True) for t in range(T)], axis=-1)

        pieces = u + v + [logits]
        used = 2 * T * d_out + T
        if out_w > used:
            pieces.append(jnp.zeros((batch, out_w - used), jnp.float32))
        # Single lane-dense, unmasked store of everything.
        out_ref[...] = jnp.concatenate(pieces, axis=-1)

    return kernel


def mmoe_model_forward(user_x, item_x, packed, num_tasks):
    """Fused forward. Inputs must be pre-padded to d_in_pad lanes (zero columns).

    Returns (user_task_emb [T,B,D], item_task_emb [T,B,D], logits [B,T])."""
    Lu, Li = packed["layout_u"], packed["layout_i"]
    B = user_x.shape[0]
    d_out = Lu["d_out"]
    T = num_tasks
    out_w = _round_up(2 * T * d_out + T, 128)

    assert user_x.shape[1] == Lu["d_in_pad"] and item_x.shape[1] == Li["d_in_pad"]

    kernel = _make_fused_kernel(Lu, Li, out_w, B)
    vmem = pl.BlockSpec(memory_space=pltpu.MemorySpace.VMEM)

    slab = pl.pallas_call(
        kernel,
        out_shape=jax.ShapeDtypeStruct((B, out_w), jnp.float32),
        in_specs=[vmem, vmem, vmem, vmem],
        out_specs=vmem,
    )(user_x.astype(jnp.float32), item_x.astype(jnp.float32),
      packed["slab_u"], packed["slab_i"])

    user_emb = slab[:, 0:T * d_out].reshape(B, T, d_out).transpose(1, 0, 2)
    item_emb = slab[:, T * d_out:2 * T * d_out].reshape(B, T, d_out).transpose(1, 0, 2)
    logits = slab[:, 2 * T * d_out:2 * T * d_out + T]
    return user_emb, item_emb, logits


# ---------------------------------------------------------------------------
# Plain-JAX glue: FeatureEmbedding + _aggregate_embeddings equivalents.
# The zero-pad to d_in_pad is fused into the concat (no extra pad op per call).
# ---------------------------------------------------------------------------
def calc_input_dim(config):
    total = 0
    for _, cfg in config.items():
        total += cfg["embedding_dim"] if cfg["type"] == "categorical" else 1
    return total


def embed_and_aggregate(features, config, tables, pad_to=None):
    parts, total = [], 0
    for name, cfg in config.items():
        if cfg["type"] == "categorical":
            emb = jnp.take(tables[name], features[name], axis=0)          # [B, emb_dim]
            total += cfg["embedding_dim"]
        else:
            emb = features[name].astype(jnp.float32).reshape(-1, 1)       # [B, 1]
            total += 1
        parts.append(emb)
    if pad_to is not None and pad_to > total:
        parts.append(jnp.zeros((parts[0].shape[0], pad_to - total), jnp.float32))
    return jnp.concatenate(parts, axis=-1)


# ---------------------------------------------------------------------------
# Deterministic parameter init (stacked per-expert layout; packed once via pack_mmoe).
# ---------------------------------------------------------------------------
def init_mmoe_params(key, d_in, hidden_dims, d_out, num_experts, num_tasks):
    h1, h2 = hidden_dims
    ks = jax.random.split(key, 8)
    s = 0.05
    return {
        "w1": jax.random.normal(ks[0], (num_experts, d_in, h1), jnp.float32) * s,
        "b1": jax.random.normal(ks[1], (num_experts, 1, h1), jnp.float32) * s,
        "w2": jax.random.normal(ks[2], (num_experts, h1, h2), jnp.float32) * s,
        "b2": jax.random.normal(ks[3], (num_experts, 1, h2), jnp.float32) * s,
        "w3": jax.random.normal(ks[4], (num_experts, h2, d_out), jnp.float32) * s,
        "b3": jax.random.normal(ks[5], (num_experts, 1, d_out), jnp.float32) * s,
        "gate_w": jax.random.normal(ks[6], (num_tasks, d_in, num_experts), jnp.float32) * s,
        "gate_b": jax.random.normal(ks[7], (num_tasks, num_experts), jnp.float32) * s,
    }


# Pure-JAX reference of one MMoE module (for correctness check).
def mmoe_ref(x, p, num_tasks):
    E = p["w1"].shape[0]
    experts = []
    for e in range(E):
        h = jax.nn.relu(x @ p["w1"][e] + p["b1"][e, 0])
        h = jax.nn.relu(h @ p["w2"][e] + p["b2"][e, 0])
        experts.append(h @ p["w3"][e] + p["b3"][e, 0])
    experts = jnp.stack(experts, axis=0)                                  # [E, B, D_out]
    outs = []
    for t in range(num_tasks):
        g = jax.nn.softmax(x @ p["gate_w"][t] + p["gate_b"][t], axis=-1)  # [B, E]
        outs.append(jnp.einsum("be,ebd->bd", g, experts))
    return jnp.stack(outs, axis=0)                                        # [T, B, D_out]


if __name__ == "__main__":
    key = jax.random.PRNGKey(0)
    B = 8
    tasks = ["ctr", "cvr"]
    num_tasks = len(tasks)
    hidden_dims = [32, 16]
    output_dim = 16
    num_experts_user = 4
    num_experts_item = 2   # item tower is hardcoded to 2 experts in the PyTorch module

    user_config = {
        "user_id":     {"type": "categorical", "vocab_size": 100, "embedding_dim": 16},
        "user_age":    {"type": "numerical"},
        "user_gender": {"type": "categorical", "vocab_size": 3, "embedding_dim": 8},
    }
    item_config = {
        "item_id":    {"type": "categorical", "vocab_size": 50, "embedding_dim": 16},
        "item_price": {"type": "numerical"},
    }

    user_input_dim = calc_input_dim(user_config)   # 25
    item_input_dim = calc_input_dim(item_config)   # 17

    # Embedding tables (FeatureEmbedding weights), deterministic.
    k_tab, k_feat, k_up, k_ip = jax.random.split(key, 4)
    user_tables, item_tables = {}, {}
    tk = jax.random.split(k_tab, 4)
    user_tables["user_id"] = jax.random.normal(tk[0], (100, 16), jnp.float32) * 0.05
    user_tables["user_gender"] = jax.random.normal(tk[1], (3, 8), jnp.float32) * 0.05
    item_tables["item_id"] = jax.random.normal(tk[2], (50, 16), jnp.float32) * 0.05

    # Input features (each from its own PRNG key).
    fk = jax.random.split(k_feat, 5)
    user_features = {
        "user_id": jax.random.randint(fk[0], (B,), 0, 100),
        "user_age": jax.random.uniform(fk[1], (B,), jnp.float32),
        "user_gender": jax.random.randint(fk[2], (B,), 0, 3),
    }
    item_features = {
        "item_id": jax.random.randint(fk[3], (B,), 0, 50),
        "item_price": jax.random.uniform(fk[4], (B,), jnp.float32),
    }

    user_params = init_mmoe_params(k_up, user_input_dim, hidden_dims, output_dim,
                                   num_experts_user, num_tasks)
    item_params = init_mmoe_params(k_ip, item_input_dim, hidden_dims, output_dim,
                                   num_experts_item, num_tasks)

    # -------- one-time weight packing (hoisted out of the forward path) --------
    packed = pack_mmoe(user_params, item_params, num_tasks)
    jax.block_until_ready(packed["slab_u"])

    # ---------------- forward pass (single fused Pallas kernel) ----------------
    user_agg = embed_and_aggregate(user_features, user_config, user_tables,
                                   pad_to=packed["layout_u"]["d_in_pad"])   # [B, 32]
    item_agg = embed_and_aggregate(item_features, item_config, item_tables,
                                   pad_to=packed["layout_i"]["d_in_pad"])   # [B, 24]

    user_task_emb, item_task_emb, logits = mmoe_model_forward(
        user_agg, item_agg, packed, num_tasks)
    # predictions[task]: [B, 1], matching the PyTorch module output.
    predictions = {task: logits[:, t:t + 1] for t, task in enumerate(tasks)}
    jax.block_until_ready(predictions["ctr"])
    jax.block_until_ready(predictions["cvr"])

    # ---------------- correctness check vs pure-JAX reference ----------------
    user_x_ref = user_agg[:, :user_input_dim]
    item_x_ref = item_agg[:, :item_input_dim]
    user_ref = mmoe_ref(user_x_ref, user_params, num_tasks)
    item_ref = mmoe_ref(item_x_ref, item_params, num_tasks)
    logits_ref = jnp.sum(user_ref * item_ref, axis=-1)                       # [T, B]
    # Tolerances account for the EUP approximate reciprocal in the softmax.
    assert jnp.allclose(user_task_emb, user_ref, atol=2e-4, rtol=2e-3)
    assert jnp.allclose(item_task_emb, item_ref, atol=2e-4, rtol=2e-3)
    assert jnp.allclose(logits, logits_ref.T, atol=2e-4, rtol=2e-3)
    assert predictions["ctr"].shape == (B, 1) and predictions["cvr"].shape == (B, 1)

    print("KERNEL_OK")
</pallas_src>

<mosaic_0001>
module attributes {stable_mosaic.version = 11 : i64} {
  func.func @kernel(%arg0: memref<8x32xf32, #tpu.memory_space<vmem>>, %arg1: memref<8x24xf32, #tpu.memory_space<vmem>>, %arg2: memref<232x256xf32, #tpu.memory_space<vmem>>, %arg3: memref<128x128xf32, #tpu.memory_space<vmem>>, %arg4: memref<8x128xf32, #tpu.memory_space<vmem>>) attributes {dimension_semantics = [], scalar_prefetch = 0 : i64, scratch_operands = 0 : i64, tpu.core_type = #tpu.core_type<tc>} {
    %c0 = arith.constant 0 : index
    %c0_0 = arith.constant 0 : index
    %0 = vector.load %arg0[%c0, %c0_0] : memref<8x32xf32, #tpu.memory_space<vmem>>, vector<8x32xf32>
    %c0_1 = arith.constant 0 : index
    %c0_2 = arith.constant 0 : index
    %1 = vector.load %arg2[%c0_1, %c0_2] : memref<232x256xf32, #tpu.memory_space<vmem>>, vector<32x136xf32>
    %c32 = arith.constant 32 : index
    %c0_3 = arith.constant 0 : index
    %2 = vector.load %arg2[%c32, %c0_3] : memref<232x256xf32, #tpu.memory_space<vmem>>, vector<1x136xf32>
    %cst = arith.constant dense<0.000000e+00> : vector<8x136xf32>
    %3 = tpu.matmul %0, %1, %cst {dimension_numbers = #tpu.dot_dimension_numbers<[1], [0], [0], [1], [0, 0, 1, 1], [], []>} : vector<8x32xf32>, vector<32x136xf32>, vector<8x136xf32> -> vector<8x136xf32>
    %4 = vector.broadcast %2 : vector<1x136xf32> to vector<8x136xf32>
    %5 = arith.addf %3, %4 : vector<8x136xf32>
    %6 = vector.extract_strided_slice %5 {offsets = [0, 0], sizes = [8, 128], strides = [1, 1]} : vector<8x136xf32> to vector<8x128xf32>
    %cst_4 = arith.constant 0.000000e+00 : f32
    %7 = vector.broadcast %cst_4 : f32 to vector<8x128xf32>
    %8 = arith.maximumf %6, %7 : vector<8x128xf32>
    %9 = vector.extract_strided_slice %5 {offsets = [0, 128], sizes = [8, 4], strides = [1, 1]} : vector<8x136xf32> to vector<8x4xf32>
    %cst_5 = arith.constant dense<0xFF800000> : vector<8xf32>
    %10 = vector.multi_reduction <maximumf>, %9, %cst_5 [1] : vector<8x4xf32> to vector<8xf32>
    %11 = vector.shape_cast %10 : vector<8xf32> to vector<8x1xf32>
    %12 = vector.broadcast %11 : vector<8x1xf32> to vector<8x4xf32>
    %13 = arith.subf %9, %12 : vector<8x4xf32>
    %14 = math.exp %13 : vector<8x4xf32>
    %cst_6 = arith.constant dense<0.000000e+00> : vector<8xf32>
    %15 = vector.multi_reduction <add>, %14, %cst_6 [1] : vector<8x4xf32> to vector<8xf32>
    %16 = vector.shape_cast %15 : vector<8xf32> to vector<8x1xf32>
    %17 = tpu.reciprocal %16 {approx = true} : vector<8x1xf32> -> vector<8x1xf32>
    %18 = vector.broadcast %17 : vector<8x1xf32> to vector<8x4xf32>
    %19 = arith.mulf %14, %18 : vector<8x4xf32>
    %20 = vector.extract_strided_slice %5 {offsets = [0, 132], sizes = [8, 4], strides = [1, 1]} : vector<8x136xf32> to vector<8x4xf32>
    %cst_7 = arith.constant dense<0xFF800000> : vector<8xf32>
    %21 = vector.multi_reduction <maximumf>, %20, %cst_7 [1] : vector<8x4xf32> to vector<8xf32>
    %22 = vector.shape_cast %21 : vector<8xf32> to vector<8x1xf32>
    %23 = vector.broadcast %22 : vector<8x1xf32> to vector<8x4xf32>
    %24 = arith.subf %20, %23 : vector<8x4xf32>
    %25 = math.exp %24 : vector<8x4xf32>
    %cst_8 = arith.constant dense<0.000000e+00> : vector<8xf32>
    %26 = vector.multi_reduction <add>, %25, %cst_8 [1] : vector<8x4xf32> to vector<8xf32>
    %27 = vector.shape_cast %26 : vector<8xf32> to vector<8x1xf32>
    %28 = tpu.reciprocal %27 {approx = true} : vector<8x1xf32> -> vector<8x1xf32>
    %29 = vector.broadcast %28 : vector<8x1xf32> to vector<8x4xf32>
    %30 = arith.mulf %25, %29 : vector<8x4xf32>
    %c40 = arith.constant 40 : index
    %c0_9 = arith.constant 0 : index
    %31 = vector.load %arg2[%c40, %c0_9] : memref<232x256xf32, #tpu.memory_space<vmem>>, vector<128x64xf32>
    %c33 = arith.constant 33 : index
    %c0_10 = arith.constant 0 : index
    %32 = vector.load %arg2[%c33, %c0_10] : memref<232x256xf32, #tpu.memory_space<vmem>>, vector<1x64xf32>
    %cst_11 = arith.constant dense<0.000000e+00> : vector<8x64xf32>
    %33 = tpu.matmul %8, %31, %cst_11 {dimension_numbers = #tpu.dot_dimension_numbers<[1], [0], [0], [1], [0, 0, 1, 1], [], []>} : vector<8x128xf32>, vector<128x64xf32>, vector<8x64xf32> -> vector<8x64xf32>
    %34 = vector.broadcast %32 : vector<1x64xf32> to vector<8x64xf32>
    %35 = arith.addf %33, %34 : vector<8x64xf32>
    %cst_12 = arith.constant 0.000000e+00 : f32
    %36 = vector.broadcast %cst_12 : f32 to vector<8x64xf32>
    %37 = arith.maximumf %35, %36 : vector<8x64xf32>
    %c168 = arith.constant 168 : index
    %c0_13 = arith.constant 0 : index
    %38 = vector.load %arg2[%c168, %c0_13] : memref<232x256xf32, #tpu.memory_space<vmem>>, vector<64x64xf32>
    %c34 = arith.constant 34 : index
    %c0_14 = arith.constant 0 : index
    %39 = vector.load %arg2[%c34, %c0_14] : memref<232x256xf32, #tpu.memory_space<vmem>>, vector<1x64xf32>
    %cst_15 = arith.constant dense<0.000000e+00> : vector<8x64xf32>
    %40 = tpu.matmul %37, %38, %cst_15 {dimension_numbers = #tpu.dot_dimension_numbers<[1], [0], [0], [1], [0, 0, 1, 1], [], []>} : vector<8x64xf32>, vector<64x64xf32>, vector<8x64xf32> -> vector<8x64xf32>
    %41 = vector.broadcast %39 : vector<1x64xf32> to vector<8x64xf32>
    %42 = arith.addf %40, %41 : vector<8x64xf32>
    %43 = vector.extract_strided_slice %19 {offsets = [0, 0], sizes = [8, 1], strides = [1, 1]} : vector<8x4xf32> to vector<8x1xf32>
    %44 = vector.extract_strided_slice %42 {offsets = [0, 0], sizes = [8, 16], strides = [1, 1]} : vector<8x64xf32> to vector<8x16xf32>
    %45 = vector.broadcast %43 : vector<8x1xf32> to vector<8x16xf32>
    %46 = arith.mulf %45, %44 : vector<8x16xf32>
    %47 = vector.extract_strided_slice %19 {offsets = [0, 1], sizes = [8, 1], strides = [1, 1]} : vector<8x4xf32> to vector<8x1xf32>
    %48 = vector.extract_strided_slice %42 {offsets = [0, 16], sizes = [8, 16], strides = [1, 1]} : vector<8x64xf32> to vector<8x16xf32>
    %49 = vector.broadcast %47 : vector<8x1xf32> to vector<8x16xf32>
    %50 = arith.mulf %49, %48 : vector<8x16xf32>
    %51 = arith.addf %46, %50 : vector<8x16xf32>
    %52 = vector.extract_strided_slice %19 {offsets = [0, 2], sizes = [8, 1], strides = [1, 1]} : vector<8x4xf32> to vector<8x1xf32>
    %53 = vector.extract_strided_slice %42 {offsets = [0, 32], sizes = [8, 16], strides = [1, 1]} : vector<8x64xf32> to vector<8x16xf32>
    %54 = vector.broadcast %52 : vector<8x1xf32> to vector<8x16xf32>
    %55 = arith.mulf %54, %53 : vector<8x16xf32>
    %56 = arith.addf %51, %55 : vector<8x16xf32>
    %57 = vector.extract_strided_slice %19 {offsets = [0, 3], sizes = [8, 1], strides = [1, 1]} : vector<8x4xf32> to vector<8x1xf32>
    %58 = vector.extract_strided_slice %42 {offsets = [0, 48], sizes = [8, 16], strides = [1, 1]} : vector<8x64xf32> to vector<8x16xf32>
    %59 = vector.broadcast %57 : vector<8x1xf32> to vector<8x16xf32>
    %60 = arith.mulf %59, %58 : vector<8x16xf32>
    %61 = arith.addf %56, %60 : vector<8x16xf32>
    %62 = vector.extract_strided_slice %30 {offsets = [0, 0], sizes = [8, 1], strides = [1, 1]} : vector<8x4xf32> to vector<8x1xf32>
    %63 = vector.extract_strided_slice %42 {offsets = [0, 0], sizes = [8, 16], strides = [1, 1]} : vector<8x64xf32> to vector<8x16xf32>
    %64 = vector.broadcast %62 : vector<8x1xf32> to vector<8x16xf32>
    %65 = arith.mulf %64, %63 : vector<8x16xf32>
    %66 = vector.extract_strided_slice %30 {offsets = [0, 1], sizes = [8, 1], strides = [1, 1]} : vector<8x4xf32> to vector<8x1xf32>
    %67 = vector.extract_strided_slice %42 {offsets = [0, 16], sizes = [8, 16], strides = [1, 1]} : vector<8x64xf32> to vector<8x16xf32>
    %68 = vector.broadcast %66 : vector<8x1xf32> to vector<8x16xf32>
    %69 = arith.mulf %68, %67 : vector<8x16xf32>
    %70 = arith.addf %65, %69 : vector<8x16xf32>
    %71 = vector.extract_strided_slice %30 {offsets = [0, 2], sizes = [8, 1], strides = [1, 1]} : vector<8x4xf32> to vector<8x1xf32>
    %72 = vector.extract_strided_slice %42 {offsets = [0, 32], sizes = [8, 16], strides = [1, 1]} : vector<8x64xf32> to vector<8x16xf32>
    %73 = vector.broadcast %71 : vector<8x1xf32> to vector<8x16xf32>
    %74 = arith.mulf %73, %72 : vector<8x16xf32>
    %75 = arith.addf %70, %74 : vector<8x16xf32>
    %76 = vector.extract_strided_slice %30 {offsets = [0, 3], sizes = [8, 1], strides = [1, 1]} : vector<8x4xf32> to vector<8x1xf32>
    %77 = vector.extract_strided_slice %42 {offsets = [0, 48], sizes = [8, 16], strides = [1, 1]} : vector<8x64xf32> to vector<8x16xf32>
    %78 = vector.broadcast %76 : vector<8x1xf32> to vector<8x16xf32>
    %79 = arith.mulf %78, %77 : vector<8x16xf32>
    %80 = arith.addf %75, %79 : vector<8x16xf32>
    %c0_16 = arith.constant 0 : index
    %c0_17 = arith.constant 0 : index
    %81 = vector.load %arg1[%c0_16, %c0_17] : memref<8x24xf32, #tpu.memory_space<vmem>>, vector<8x24xf32>
    %c0_18 = arith.constant 0 : index
    %c0_19 = arith.constant 0 : index
    %82 = vector.load %arg3[%c0_18, %c0_19] : memref<128x128xf32, #tpu.memory_space<vmem>>, vector<24x68xf32>
    %c24 = arith.constant 24 : index
    %c0_20 = arith.constant 0 : index
    %83 = vector.load %arg3[%c24, %c0_20] : memref<128x128xf32, #tpu.memory_space<vmem>>, vector<1x68xf32>
    %cst_21 = arith.constant dense<0.000000e+00> : vector<8x68xf32>
    %84 = tpu.matmul %81, %82, %cst_21 {dimension_numbers = #tpu.dot_dimension_numbers<[1], [0], [0], [1], [0, 0, 1, 1], [], []>} : vector<8x24xf32>, vector<24x68xf32>, vector<8x68xf32> -> vector<8x68xf32>
    %85 = vector.broadcast %83 : vector<1x68xf32> to vector<8x68xf32>
    %86 = arith.addf %84, %85 : vector<8x68xf32>
    %87 = vector.extract_strided_slice %86 {offsets = [0, 0], sizes = [8, 64], strides = [1, 1]} : vector<8x68xf32> to vector<8x64xf32>
    %cst_22 = arith.constant 0.000000e+00 : f32
    %88 = vector.broadcast %cst_22 : f32 to vector<8x64xf32>
    %89 = arith.maximumf %87, %88 : vector<8x64xf32>
    %90 = vector.extract_strided_slice %86 {offsets = [0, 64], sizes = [8, 2], strides = [1, 1]} : vector<8x68xf32> to vector<8x2xf32>
    %cst_23 = arith.constant dense<0xFF800000> : vector<8xf32>
    %91 = vector.multi_reduction <maximumf>, %90, %cst_23 [1] : vector<8x2xf32> to vector<8xf32>
    %92 = vector.shape_cast %91 : vector<8xf32> to vector<8x1xf32>
    %93 = vector.broadcast %92 : vector<8x1xf32> to vector<8x2xf32>
    %94 = arith.subf %90, %93 : vector<8x2xf32>
    %95 = math.exp %94 : vector<8x2xf32>
    %cst_24 = arith.constant dense<0.000000e+00> : vector<8xf32>
    %96 = vector.multi_reduction <add>, %95, %cst_24 [1] : vector<8x2xf32> to vector<8xf32>
    %97 = vector.shape_cast %96 : vector<8xf32> to vector<8x1xf32>
    %98 = tpu.reciprocal %97 {approx = true} : vector<8x1xf32> -> vector<8x1xf32>
    %99 = vector.broadcast %98 : vector<8x1xf32> to vector<8x2xf32>
    %100 = arith.mulf %95, %99 : vector<8x2xf32>
    %101 = vector.extract_strided_slice %86 {offsets = [0, 66], sizes = [8, 2], strides = [1, 1]} : vector<8x68xf32> to vector<8x2xf32>
    %cst_25 = arith.constant dense<0xFF800000> : vector<8xf32>
    %102 = vector.multi_reduction <maximumf>, %101, %cst_25 [1] : vector<8x2xf32> to vector<8xf32>
    %103 = vector.shape_cast %102 : vector<8xf32> to vector<8x1xf32>
    %104 = vector.broadcast %103 : vector<8x1xf32> to vector<8x2xf32>
    %105 = arith.subf %101, %104 : vector<8x2xf32>
    %106 = math.exp %105 : vector<8x2xf32>
    %cst_26 = arith.constant dense<0.000000e+00> : vector<8xf32>
    %107 = vector.multi_reduction <add>, %106, %cst_26 [1] : vector<8x2xf32> to vector<8xf32>
    %108 = vector.shape_cast %107 : vector<8xf32> to vector<8x1xf32>
    %109 = tpu.reciprocal %108 {approx = true} : vector<8x1xf32> -> vector<8x1xf32>
    %110 = vector.broadcast %109 : vector<8x1xf32> to vector<8x2xf32>
    %111 = arith.mulf %106, %110 : vector<8x2xf32>
    %c32_27 = arith.constant 32 : index
    %c0_28 = arith.constant 0 : index
    %112 = vector.load %arg3[%c32_27, %c0_28] : memref<128x128xf32, #tpu.memory_space<vmem>>, vector<64x32xf32>
    %c25 = arith.constant 25 : index
    %c0_29 = arith.constant 0 : index
    %113 = vector.load %arg3[%c25, %c0_29] : memref<128x128xf32, #tpu.memory_space<vmem>>, vector<1x32xf32>
    %cst_30 = arith.constant dense<0.000000e+00> : vector<8x32xf32>
    %114 = tpu.matmul %89, %112, %cst_30 {dimension_numbers = #tpu.dot_dimension_numbers<[1], [0], [0], [1], [0, 0, 1, 1], [], []>} : vector<8x64xf32>, vector<64x32xf32>, vector<8x32xf32> -> vector<8x32xf32>
    %115 = vector.broadcast %113 : vector<1x32xf32> to vector<8x32xf32>
    %116 = arith.addf %114, %115 : vector<8x32xf32>
    %cst_31 = arith.constant 0.000000e+00 : f32
    %117 = vector.broadcast %cst_31 : f32 to vector<8x32xf32>
    %118 = arith.maximumf %116, %117 : vector<8x32xf32>
    %c96 = arith.constant 96 : index
    %c0_32 = arith.constant 0 : index
    %119 = vector.load %arg3[%c96, %c0_32] : memref<128x128xf32, #tpu.memory_space<vmem>>, vector<32x32xf32>
    %c26 = arith.constant 26 : index
    %c0_33 = arith.constant 0 : index
    %120 = vector.load %arg3[%c26, %c0_33] : memref<128x128xf32, #tpu.memory_space<vmem>>, vector<1x32xf32>
    %cst_34 = arith.constant dense<0.000000e+00> : vector<8x32xf32>
    %121 = tpu.matmul %118, %119, %cst_34 {dimension_numbers = #tpu.dot_dimension_numbers<[1], [0], [0], [1], [0, 0, 1, 1], [], []>} : vector<8x32xf32>, vector<32x32xf32>, vector<8x32xf32> -> vector<8x32xf32>
    %122 = vector.broadcast %120 : vector<1x32xf32> to vector<8x32xf32>
    %123 = arith.addf %121, %122 : vector<8x32xf32>
    %124 = vector.extract_strided_slice %100 {offsets = [0, 0], sizes = [8, 1], strides = [1, 1]} : vector<8x2xf32> to vector<8x1xf32>
    %125 = vector.extract_strided_slice %123 {offsets = [0, 0], sizes = [8, 16], strides = [1, 1]} : vector<8x32xf32> to vector<8x16xf32>
    %126 = vector.broadcast %124 : vector<8x1xf32> to vector<8x16xf32>
    %127 = arith.mulf %126, %125 : vector<8x16xf32>
    %128 = vector.extract_strided_slice %100 {offsets = [0, 1], sizes = [8, 1], strides = [1, 1]} : vector<8x2xf32> to vector<8x1xf32>
    %129 = vector.extract_strided_slice %123 {offsets = [0, 16], sizes = [8, 16], strides = [1, 1]} : vector<8x32xf32> to vector<8x16xf32>
    %130 = vector.broadcast %128 : vector<8x1xf32> to vector<8x16xf32>
    %131 = arith.mulf %130, %129 : vector<8x16xf32>
    %132 = arith.addf %127, %131 : vector<8x16xf32>
    %133 = vector.extract_strided_slice %111 {offsets = [0, 0], sizes = [8, 1], strides = [1, 1]} : vector<8x2xf32> to vector<8x1xf32>
    %134 = vector.extract_strided_slice %123 {offsets = [0, 0], sizes = [8, 16], strides = [1, 1]} : vector<8x32xf32> to vector<8x16xf32>
    %135 = vector.broadcast %133 : vector<8x1xf32> to vector<8x16xf32>
    %136 = arith.mulf %135, %134 : vector<8x16xf32>
    %137 = vector.extract_strided_slice %111 {offsets = [0, 1], sizes = [8, 1], strides = [1, 1]} : vector<8x2xf32> to vector<8x1xf32>
    %138 = vector.extract_strided_slice %123 {offsets = [0, 16], sizes = [8, 16], strides = [1, 1]} : vector<8x32xf32> to vector<8x16xf32>
    %139 = vector.broadcast %137 : vector<8x1xf32> to vector<8x16xf32>
    %140 = arith.mulf %139, %138 : vector<8x16xf32>
    %141 = arith.addf %136, %140 : vector<8x16xf32>
    %142 = arith.mulf %61, %132 : vector<8x16xf32>
    %cst_35 = arith.constant dense<0.000000e+00> : vector<8xf32>
    %143 = vector.multi_reduction <add>, %142, %cst_35 [1] : vector<8x16xf32> to vector<8xf32>
    %144 = vector.shape_cast %143 : vector<8xf32> to vector<8x1xf32>
    %145 = arith.mulf %80, %141 : vector<8x16xf32>
    %cst_36 = arith.constant dense<0.000000e+00> : vector<8xf32>
    %146 = vector.multi_reduction <add>, %145, %cst_36 [1] : vector<8x16xf32> to vector<8xf32>
    %147 = vector.shape_cast %146 : vector<8xf32> to vector<8x1xf32>
    %148 = tpu.concatenate %144, %147 in 1 : vector<8x1xf32>, vector<8x1xf32> -> vector<8x2xf32>
    %cst_37 = arith.constant 0.000000e+00 : f32
    %149 = vector.broadcast %cst_37 : f32 to vector<8x62xf32>
    %150 = tpu.concatenate %61, %80, %132, %141, %148, %149 in 1 : vector<8x16xf32>, vector<8x16xf32>, vector<8x16xf32>, vector<8x16xf32>, vector<8x2xf32>, vector<8x62xf32> -> vector<8x128xf32>
    %c0_38 = arith.constant 0 : index
    %c0_39 = arith.constant 0 : index
    %151 = vector.load %arg4[%c0_38, %c0_39] : memref<8x128xf32, #tpu.memory_space<vmem>>, vector<8x128xf32>
    tpu.vector_store %arg4[%c0_38, %c0_39], %150 {strides = array<i32>} : memref<8x128xf32, #tpu.memory_space<vmem>>, vector<8x128xf32>,
    return
  }
}

</mosaic_0001>

<bundles_post_ra>
// kernel: tpu_custom_call.1
= control target key start
LH: loop header
LB: loop body
LE: loop exit
PB: predicated region body
PF: predicated region fallthrough
CT: control target
= control target key end

     0   :  { %9 = vsyncpa [#allocation3], 0  ;;  %s1378_s0 = inlined_call_operand.hbm [shape: f32[8,32], index: 0, kind: input, shape index: {}]   ;;  %s1379_s1 = inlined_call_operand.hbm [shape: f32[8,24], index: 1, kind: input, shape index: {}]   ;;  %s1380_s2 = inlined_call_operand.hbm [shape: f32[232,256], index: 2, kind: input, shape index: {}]   ;;  %s1381_s3 = inlined_call_operand.hbm [shape: f32[128,128], index: 3, kind: input, shape index: {}]   ;;  %s1382_s4 = inlined_call_operand.hbm [shape: f32[8,128], index: 4, kind: output, shape index: {}]  }
   0x1   :  { %10 = vsyncpa [#allocation6], 0 }
   0x2   :  { %11 = vsyncpa [#allocation9], 0 }
   0x3   :  { %12 = vsyncpa [#allocation4], 0  ;;  %s1197_s15 = smov [#allocation5]   ;;  %s1198_s17 = smov [#allocation2]  }
   0x4   :  { %s29_s16 = sshll.u32 %s1197_s15, 4  ;;  %s19_s18 = sshll.u32 %s1198_s17, 4  ;;  %s30_s16 = int_to_ptr.vmem [resolvable:$true] %s29_s16  ;;  %s20_s18 = int_to_ptr.vmem [resolvable:$true] %s19_s18 }
   0x5   :  { %s1079_s21 = scalar_lea.hbm %s1379_s1, 128 }
   0x6   :  { %p1080_p0 = scmp.ne.s32.totalorder %s1379_s1, %s1079_s21  ;;  %p1083_p1 = scmp.lt.u32.totalorder %s1079_s21, %s1379_s1 }
   0x8   :  { %p1085_p2 = pnand %p1083_p1, %p1080_p0 }
   0xa   :  { %1088 = shalt.err (!%p1085_p2)
}
   0xb   :  { %s1089_s26 = scalar_lea.vmem %s30_s16, 128  ;;  %p1094_p4 = scmp.lt.s32.totalorder %s30_s16, %s30_s16 }
   0xc   :  { %p1090_p3 = scmp.ne.s32.totalorder %s30_s16, %s1089_s26  ;;  %p1095_p5 = scmp.lt.s32.totalorder %s1089_s26, %s1089_s26 }
   0xe   :  { %p1096_p6 = por %p1095_p5, %p1094_p4 }
  0x10   :  { %p1097_p7 = pnand %p1096_p6, %p1090_p3 }
  0x12   :  { %1100 = shalt.err (!%p1097_p7)
}
  0x13   :  { %32 = dma.hbm_to_vmem [thread:$0]  %s1379_s1, 128, %s30_s16, [#allocation6]  }
  0x14   :  { %s1101_s5 = scalar_lea.hbm %s1378_s0, 128 }
  0x15   :  { %p1102_p8 = scmp.ne.s32.totalorder %s1378_s0, %s1101_s5  ;;  %p1105_p9 = scmp.lt.u32.totalorder %s1101_s5, %s1378_s0 }
  0x17   :  { %p1107_p10 = pnand %p1105_p9, %p1102_p8 }
  0x19   :  { %1110 = shalt.err (!%p1107_p10)
}
  0x1a   :  { %s1111_s10 = scalar_lea.vmem %s20_s18, 128  ;;  %p1116_p12 = scmp.lt.s32.totalorder %s20_s18, %s20_s18 }
  0x1b   :  { %p1112_p11 = scmp.ne.s32.totalorder %s20_s18, %s1111_s10  ;;  %p1117_p13 = scmp.lt.s32.totalorder %s1111_s10, %s1111_s10 }
  0x1d   :  { %p1118_p0 = por %p1117_p13, %p1116_p12 }
  0x1f   :  { %p1119_p1 = pnand %p1118_p0, %p1112_p11 }
  0x21   :  { %1122 = shalt.err (!%p1119_p1)
}
  0x22   :  { %22 = dma.hbm_to_vmem [thread:$0]  %s1378_s0, 128, %s20_s18, [#allocation3]  }
  0x23   :  { %s1199_s12 = smov [#allocation7]   ;;  %s1123_s16 = scalar_lea.hbm %s1380_s2, 7424 }
  0x24   :  { %s38_s13 = sshll.u32 %s1199_s12, 4  ;;  %p1124_p2 = scmp.ne.s32.totalorder %s1380_s2, %s1123_s16  ;;  %s39_s13 = int_to_ptr.vmem [resolvable:$true] %s38_s13 }
  0x25   :  { %p1127_p3 = scmp.lt.u32.totalorder %s1123_s16, %s1380_s2 }
  0x27   :  { %p1129_p4 = pnand %p1127_p3, %p1124_p2 }
  0x29   :  { %1132 = shalt.err (!%p1129_p4)
}
  0x2a   :  { %s1133_s22 = scalar_lea.vmem %s39_s13, 7424  ;;  %p1138_p6 = scmp.lt.s32.totalorder %s39_s13, %s39_s13 }
  0x2b   :  { %p1134_p5 = scmp.ne.s32.totalorder %s39_s13, %s1133_s22  ;;  %p1139_p7 = scmp.lt.s32.totalorder %s1133_s22, %s1133_s22 }
  0x2d   :  { %p1140_p8 = por %p1139_p7, %p1138_p6 }
  0x2f   :  { %p1141_p9 = pnand %p1140_p8, %p1134_p5 }
  0x31   :  { %1144 = shalt.err (!%p1141_p9)
}
  0x32   :  { %s1200_s0 = smov 256   ;;  %s1201_s18 = smov 16  }
  0x33   :  { %44 = dma.hbm_to_vmem [thread:$0]  %s1380_s2, 7424, %s39_s13, [#allocation6], %s1200_s0, %s1200_s0, %s1201_s18  }
  0x34   :  { %s1202_s25 = smov [#allocation8]   ;;  %s1145_s29 = scalar_lea.hbm %s1381_s3, 2048 }
  0x35   :  { %s50_s26 = sshll.u32 %s1202_s25, 4  ;;  %p1146_p10 = scmp.ne.s32.totalorder %s1381_s3, %s1145_s29  ;;  %s51_s26 = int_to_ptr.vmem [resolvable:$true] %s50_s26 }
  0x36   :  { %p1149_p11 = scmp.lt.u32.totalorder %s1145_s29, %s1381_s3 }
  0x38   :  { %p1151_p12 = pnand %p1149_p11, %p1146_p10 }
  0x3a   :  { %1154 = shalt.err (!%p1151_p12)
}
  0x3b   :  { %s1155_s8 = scalar_lea.vmem %s51_s26, 2048  ;;  %p1160_p0 = scmp.lt.s32.totalorder %s51_s26, %s51_s26 }
  0x3c   :  { %p1156_p13 = scmp.ne.s32.totalorder %s51_s26, %s1155_s8  ;;  %p1161_p1 = scmp.lt.s32.totalorder %s1155_s8, %s1155_s8 }
  0x3e   :  { %p1162_p2 = por %p1161_p1, %p1160_p0 }
  0x40   :  { %p1163_p3 = pnand %p1162_p2, %p1156_p13 }
  0x42   :  { %1166 = shalt.err (!%p1163_p3)
}
  0x43   :  { %s1203_s2 = smov 128   ;;  %s1204_s9 = smov 8  }
  0x44   :  { %56 = dma.hbm_to_vmem [thread:$0]  %s1381_s3, 2048, %s51_s26, [#allocation9], %s1203_s2, %s1203_s2, %s1204_s9  }
  0x45   :  { %1189 = dma.done.wait [#allocation3], 128  }
  0x46   :  { %1190 = vsyncadd [#allocation3], 4294967168 }
  0x47   :  { %1191 = dma.done.wait [#allocation6], 7552  }
  0x48   :  { %1192 = vsyncadd [#allocation6], 4294959744 }
  0x49   :  { %1193 = dma.done.wait [#allocation9], 2048  }
  0x4a   :  { %1194 = vsyncadd [#allocation9], 4294965248  ;;  %v1205_v0 = vmov 0.0   ;;  %v1206_v1 = vmov 0.0|0.0   ;;  %v71_v2 = vld [vmem:[#allocation7 + $0x8] sm:$0xff]  ;;  %v73_v3 = vld [vmem:[#allocation7 + $0x18] sm:$0xff]  ;;  %v81_v39 = vlaneseq }
  0x4b   :  { %159 = vmatprep.mubr.f32.mxu0 %v1205_v0  ;;  %961 = vmatprep.subr.bf16.mxu1 %v1206_v1  ;;  %v70_v4 = vld [vmem:[#allocation7] sm:$0xff]  ;;  %v953_v5 = vpack.c.bf16 %v73_v3, %v71_v2  ;;  %v72_v6 = vld [vmem:[#allocation7 + $0x10] sm:$0xff]  ;;  %v75_v7 = vld [vmem:[#allocation7 + $0x28] sm:$0xff]  ;;  %vm91_vm0 = vcmask 261120   ;;  %vm1207_vm1 = vmmov 0   ;;  %vm179_vm2 = vcmask 64544  }
  0x4c   :  { %v77_v8 = vld [vmem:[#allocation7 + $0x38] sm:$0xff]  ;;  %v955_v9 = vpack.c.bf16 %v72_v6, %v70_v4  ;;  %v74_v11 = vld [vmem:[#allocation7 + $0x20] sm:$0xff]  ;;  %v76_v12 = vld [vmem:[#allocation7 + $0x30] sm:$0xff]  ;;  %892 = vmatprep.mubr.msk.f32.mxu1 %vm1207_vm1, %v1205_v0  ;;  %v82_v40 = vshrl.u32 %v81_v39, 7  ;;  %vm292_vm3 = vcmask 523264   ;;  %vm447_vm4 = vcmask 195584  }
  0x4d   :  { %v957_v10 = vpack.c.bf16 %v77_v8, %v75_v7  ;;  %954 = vmatprep.subr.bf16.mxu0 %v953_v5  ;;  %v195_v13 = vld [vmem:[#allocation7 + $0x50] sm:$0xff]  ;;  %v196_v14 = vld [vmem:[#allocation7 + $0x60] sm:$0xff]  ;;  %v959_v16 = vpack.c.bf16 %v76_v12, %v74_v11  ;;  %v440_v4 = vld [vmem:[#allocation8 + $0x8] sm:$0xff]  ;;  %vm539_vm5 = vcmask 556560   ;;  %vm522_vm6 = vcmask 540160   ;;  %s1208_s3 = smov 124  }
  0x4e   :  { %v197_v15 = vld [vmem:[#allocation7 + $0x70] sm:$0xff]  ;;  %956 = vmatpush1.bf16.msra.mxu0 %v955_v9  ;;  %v962_v17 = vpack.c.bf16 %v196_v14, %v195_v13  ;;  %v198_v18 = vld [vmem:[#allocation7 + $0x80] sm:$0xff]  ;;  %v83_v41 = vsub.s32 0, %v82_v40  ;;  %v87_v43 = vsub.s32 1, %v82_v40  ;;  %v556_v11 = vld [vmem:[#allocation8 + $0x28] sm:$0xff]  ;;  %vm167_vm7 = vcmask 31744  }
  0x4f   :  { %958 = vmatprep.subr.bf16.mxu0 %v957_v10  ;;  %v965_v19 = vpack.c.bf16 %v198_v18, %v197_v15  ;;  %v199_v20 = vld [vmem:[#allocation7 + $0x90] sm:$0xff]  ;;  %v200_v21 = vld [vmem:[#allocation7 + $0xa0] sm:$0xff]  ;;  %v438_v13 = vld [vmem:[#allocation5] sm:$0xff]  ;;  %s1209_s11 = smov 64   ;;  %s1210_s12 = smov 62   ;;  %vm533_vm8 = vcmask 15360  }
  0x50   :  { %963 = vmatpush3.bf16.msra.mxu1 %v962_v17  ;;  %v69_v22 = vld [vmem:[#allocation2] sm:$0xff]  ;;  %v968_v23 = vpack.c.bf16 %v200_v21, %v199_v20  ;;  %v202_v25 = vld [vmem:[#allocation7 + $0xc0] sm:$0xff]  ;;  %s1219_s13 = smov 112   ;;  %s1224_s14 = smov 96   ;;  %vm757_vm9 = vcmask 130048   ;;  %vm765_vm10 = vcmask 7168  }
  0x51   :  { %964 = vmatprep.subr.bf16.mxu1 %v1206_v1  ;;  %v201_v24 = vld [vmem:[#allocation7 + $0xb0] sm:$0xff]  ;;  %v204_v28 = vld [vmem:[#allocation7 + $0xe0] sm:$0xff]  ;;  %s1225_s15 = smov 80   ;;  %s1226_s16 = smov 32   ;;  %vm785_vm11 = vcmask 392192   ;;  %vm788_vm12 = vcmask 539648  }
  0x52   :  { %960 = vmatpush1.bf16.msra.mxu0 %v959_v16  ;;  %v971_v26 = vpack.c.bf16 %v202_v25, %v201_v24  ;;  %v203_v27 = vld [vmem:[#allocation7 + $0xd0] sm:$0xff]  ;;  %v206_v31 = vld [vmem:[#allocation7 + $0x100] sm:$0xff]  ;;  %v558_v16 = vld [vmem:[#allocation8 + $0x38] sm:$0xff]  ;;  %s1227_s17 = smov 48   ;;  %s1228_s19 = smov [#allocation10]  }
  0x53   :  { %985 = vmatprep.subr.bf16.mxu0 %v1206_v1  ;;  %v974_v29 = vpack.c.bf16 %v204_v28, %v203_v27  ;;  %v205_v30 = vld [vmem:[#allocation7 + $0xf0] sm:$0xff]  ;;  %v208_v34 = vld [vmem:[#allocation7 + $0x120] sm:$0xff]  ;;  %s797_s20 = sshll.u32 %s1228_s19, 4  ;;  %s798_s20 = int_to_ptr.vmem [resolvable:$true] %s797_s20 }
  0x54   :  { %966 = vmatpush3.bf16.msra.mxu1 %v965_v19  ;;  %v977_v32 = vpack.c.bf16 %v206_v31, %v205_v30  ;;  %v207_v33 = vld [vmem:[#allocation7 + $0x110] sm:$0xff]  ;;  %v210_v37 = vld [vmem:[#allocation7 + $0x140] sm:$0xff]  ;;  %v560_v19 = vld [vmem:[#allocation8 + $0x48] sm:$0xff]  ;;  %s1167_s21 = scalar_lea.vmem %s798_s20, 128  ;;  %p1172_p5 = scmp.lt.s32.totalorder %s798_s20, %s798_s20 }
  0x55   :  { %808 = vmatmul.mubr.msk.f32.vlgmr.msra.gmra.mrb[0].mxu0 %vm91_vm0, %v69_v22  ;;  %967 = vmatprep.subr.bf16.mxu1 %v1206_v1  ;;  %v980_v35 = vpack.c.bf16 %v208_v34, %v207_v33  ;;  %v209_v36 = vld [vmem:[#allocation7 + $0x130] sm:$0xff]  ;;  %v79_v42 = vld [vmem:[#allocation7 + $0x40] ss:$8 sm:$0x3]  ;;  %v211_v2 = vld [vmem:[#allocation7 + $0x41] ss:$0 sm:$0xff]  ;;  %p1168_p4 = scmp.ne.s32.totalorder %s798_s20, %s1167_s21  ;;  %p1173_p6 = scmp.lt.s32.totalorder %s1167_s21, %s1167_s21 }
  0x56   :  { %v983_v38 = vpack.c.bf16 %v210_v37, %v209_v36  ;;  %911 = vmatprep.mubr.msk.f32.mxu0 %vm1207_vm1, %v1205_v0  ;;  %v84_v44 = vrot.slane %v79_v42, %v83_v41  ;;  %v88_v45 = vrot.slane %v79_v42, %v87_v43  ;;  %v283_v52 = vld [vmem:[#allocation7 + $0x150] sm:$0xff]  ;;  %v284_v53 = vld [vmem:[#allocation7 + $0x160] sm:$0xff]  ;;  %v562_v22 = vld [vmem:[#allocation8 + $0x58] sm:$0xff] }
  0x57   :  { %v285_v54 = vld [vmem:[#allocation7 + $0x170] sm:$0xff]  ;;  %v986_v55 = vpack.c.bf16 %v284_v53, %v283_v52  ;;  %v286_v56 = vld [vmem:[#allocation7 + $0x180] sm:$0xff]  ;;  %v645_v41 = vld [vmem:[#allocation8 + $0x78] sm:$0xff]  ;;  %v1211_v53 = vmov 5   ;;  %p1174_p7 = por %p1173_p6, %p1172_p5 }
  0x58   :  { %969 = vmatpush3.bf16.msra.mxu1 %v968_v23  ;;  %v989_v57 = vpack.c.bf16 %v286_v56, %v285_v54  ;;  %v287_v58 = vld [vmem:[#allocation7 + $0x190] sm:$0xff]  ;;  %v288_v59 = vld [vmem:[#allocation7 + $0x1a0] sm:$0xff]  ;;  %1051 = vset.pattern.permute.xlu0 %v1211_v53 }
  0x59   :  { %970 = vmatprep.subr.bf16.mxu1 %v1206_v1  ;;  %987 = vmatpush3.bf16.msra.mxu0 %v986_v55  ;;  %v992_v60 = vpack.c.bf16 %v288_v59, %v287_v58  ;;  %v289_v61 = vld [vmem:[#allocation7 + $0x1b0] sm:$0xff]  ;;  %v290_v62 = vld [vmem:[#allocation7 + $0x1c0] sm:$0xff]  ;;  %v812_v59 = vld [vmem:[#allocation8 + $0x19] ss:$0 sm:$0xff]  ;;  %p1175_p8 = pnand %p1174_p7, %p1168_p4 }
  0x5a   :  { %988 = vmatprep.subr.bf16.mxu0 %v1206_v1  ;;  %v995_v63 = vpack.c.bf16 %v290_v62, %v289_v61  ;;  %v439_v3 = vld [vmem:[#allocation8] sm:$0xff]  ;;  %v441_v12 = vld [vmem:[#allocation8 + $0x10] sm:$0xff] }
  0x5b   :  { %v998_v8 = vpack.c.bf16 %v440_v4, %v439_v3  ;;  %v555_v10 = vld [vmem:[#allocation8 + $0x20] sm:$0xff]  ;;  %v557_v15 = vld [vmem:[#allocation8 + $0x30] sm:$0xff] }
  0x5c   :  { %972 = vmatpush3.bf16.msra.mxu1 %v971_v26  ;;  %v1001_v14 = vpack.c.bf16 %v556_v11, %v555_v10  ;;  %v1004_v17 = vpack.c.bf16 %v558_v16, %v557_v15  ;;  %v559_v18 = vld [vmem:[#allocation8 + $0x40] sm:$0xff]  ;;  %v561_v21 = vld [vmem:[#allocation8 + $0x50] sm:$0xff]  ;;  %v810_v26 = vld [vmem:[#allocation8 + $0x18] ss:$0 sm:$0xff]  ;;  %v1216_v15 = vmov 3   ;;  %v1217_v16 = vmov 7  }
  0x5d   :  { %973 = vmatprep.subr.bf16.mxu1 %v1206_v1  ;;  %990 = vmatpush3.bf16.msra.mxu0 %v989_v57  ;;  %v1007_v20 = vpack.c.bf16 %v560_v19, %v559_v18  ;;  %v1010_v23 = vpack.c.bf16 %v562_v22, %v561_v21  ;;  %v642_v37 = vld [vmem:[#allocation8 + $0x60] sm:$0xff]  ;;  %v644_v40 = vld [vmem:[#allocation8 + $0x70] sm:$0xff] }
  0x5e   :  { %991 = vmatprep.subr.bf16.mxu0 %v1206_v1  ;;  %v1016_v42 = vpack.c.bf16 %v645_v41, %v644_v40 }
  0x60   :  { %975 = vmatpush3.bf16.msra.mxu1 %v974_v29 }
  0x61   :  { %976 = vmatprep.subr.bf16.mxu1 %v1206_v1  ;;  %993 = vmatpush3.bf16.msra.mxu0 %v992_v60 }
  0x62   :  { %994 = vmatprep.subr.bf16.mxu0 %v1206_v1 }
  0x64   :  { %978 = vmatpush3.bf16.msra.mxu1 %v977_v32 }
  0x65   :  { %979 = vmatprep.subr.bf16.mxu1 %v1206_v1  ;;  %996 = vmatpush3.bf16.msra.mxu0 %v995_v63  ;;  %v1212_v63 = vmov 1  }
  0x66   :  { %997 = vmatprep.subr.bf16.mxu0 %v1206_v1  ;;  %1050 = vset.pattern.permute.xlu1 %v1212_v63 }
  0x68   :  { %981 = vmatpush3.bf16.msra.mxu1 %v980_v35 }
  0x69   :  { %982 = vmatprep.subr.bf16.mxu1 %v1206_v1 }
  0x6c   :  { %984 = vmatpush3.bf16.msra.mxu1 %v983_v38  ;;  %v643_v38 = vld [vmem:[#allocation8 + $0x68] sm:$0xff] }
  0x6d   :  { %1012 = vmatprep.subr.bf16.mxu1 %v1206_v1  ;;  %v1013_v39 = vpack.c.bf16 %v643_v38, %v642_v37 }
 0x128   :  { %v161_v46 = vpop.f32.mrb[0].mxu0 }
 0x129   :  { %v162_v47 = vadd.f32 %v161_v46, %v84_v44  ;;  %v163_v48 = vpop.f32.mrb[1].mxu0 }
 0x12a   :  { %v1319_v49 = vadd.f32 %v163_v48, %v88_v45 }
 0x12b   :  { %v166_v50 = vmax.f32 %v162_v47, 0.0 }
 0x12c   :  { %v180_v51 = vsel %vm179_vm2, %v1319_v49, -inf  ;;  %v168_v34 = vsel %vm167_vm7, %v1319_v49, -inf }
 0x12d   :  { %181 = vmax.xlane.f32.xlu0 %v180_v51  ;;  %893 = vmatmul.mubr.f32.vlgmr.msra.gmra.mrb[0].mxu1 %v166_v50 }
 0x12e   :  { %950 = vmatprep.mubr.msk.f32.mxu1 %vm1207_vm1, %v1205_v0  ;;  %1014 = vmatpush3.bf16.msra.mxu1 %v1013_v39 }
 0x12f   :  { %1015 = vmatprep.subr.bf16.mxu1 %v1206_v1 }
 0x132   :  { %1017 = vmatpush3.bf16.msra.mxu1 %v1016_v42 }
 0x1ba   :  { %v182_v32 = vpop.xlane.xlu0 %181 }
 0x1bb   :  { %v183_v33 = vsub.f32 %v1319_v49, %v182_v32  ;;  %v1223_v32 = vmov 66  }
 0x1bd   :  { %v184_v35 = vmul.f32 1.442695, %v183_v33 }
 0x1bf   :  { %1063 = vpow2.f32 %v184_v35 }
 0x1c9   :  { %v1064_v36 = vpop.eup %1063 }
 0x200   :  { %v278_v5 = vpop.f32.mrb[0].mxu1 }
 0x201   :  { %v279_v6 = vadd.f32 %v278_v5, %v211_v2  ;;  %v894_v7 = vpop.f32.mrb[1].mxu1 }
 0x203   :  { %v282_v9 = vmax.f32 %v279_v6, 0.0 }
 0x205   :  { %912 = vmatmul.mubr.msk.f32.vlgmr.msra.gmra.mrb[2].mxu0 %vm292_vm3, %v282_v9  ;;  %v1213_v9 = vmov 64  }
 0x206   :  { %999 = vmatpush3.bf16.msra.mxu0 %v998_v8  ;;  %920 = vmatprep.mubr.msk.f32.mxu0 %vm1207_vm1, %v1205_v0 }
 0x207   :  { %918 = vmatprep.subr.mxu0 %v1205_v0 }
 0x20a   :  { %919 = vmatpush3.msra.mxu0 %v441_v12 }
 0x20b   :  { %921 = vmatmul.mubr.msk.f32.vlgmr.msra.gmra.mrb[4].mxu0 %vm447_vm4, %v438_v13  ;;  %1000 = vmatprep.subr.bf16.mxu0 %v1206_v1  ;;  %v1214_v13 = vmov 2  }
 0x20c   :  { %1002 = vmatpush3.bf16.msra.mxu0 %v1001_v14  ;;  %939 = vmatprep.mubr.msk.f32.mxu0 %vm1207_vm1, %v1205_v0  ;;  %v1215_v14 = vmov 6  }
 0x20d   :  { %1003 = vmatprep.subr.bf16.mxu0 %v1206_v1 }
 0x210   :  { %1005 = vmatpush3.bf16.msra.mxu0 %v1004_v17  ;;  %v1218_v17 = vmov 65  }
 0x211   :  { %1006 = vmatprep.subr.bf16.mxu0 %v1206_v1 }
 0x214   :  { %1008 = vmatpush3.bf16.msra.mxu0 %v1007_v20  ;;  %v291_v20 = vld [vmem:[#allocation7 + $0x42] ss:$0 sm:$0xff] }
 0x215   :  { %1009 = vmatprep.subr.bf16.mxu0 %v1206_v1 }
 0x218   :  { %1011 = vmatpush3.bf16.msra.mxu0 %v1010_v23 }
 0x2d8   :  { %v1338_v24 = vpop.f32.mrb[2].mxu0 }
 0x2d9   :  { %v913_v25 = vpop.f32.mrb[3].mxu0  ;;  %v363_v23 = vadd.f32 %v1338_v24, %v291_v20  ;;  %v1222_v24 = vmov 4  }
 0x2de   :  { %v517_v0 = vpop.f32.mrb[4].mxu0 }
 0x2df   :  { %v518_v27 = vadd.f32 %v810_v26, %v517_v0  ;;  %v922_v28 = vpop.f32.mrb[5].mxu0 }
 0x2e1   :  { %v540_v29 = vsel %vm539_vm5, %v518_v27, -inf  ;;  %v523_v30 = vsel %vm522_vm6, %v518_v27, -inf  ;;  %v521_v31 = vmax.f32 %v518_v27, 0.0 }
 0x2e2   :  { %541 = vmax.xlane.f32.xlu1 %v540_v29  ;;  %524 = vmax.xlane.f32.xlu0 %v523_v30  ;;  %v1220_v30 = vmov 67  }
 0x2e3   :  { %940 = vmatmul.mubr.msk.f32.vlgmr.msra.gmra.mrb[6].mxu0 %vm292_vm3, %v521_v31  ;;  %v1221_v31 = vmov 0  }
 0x2e6   :  { %169 = vmax.xlane.f32.xlu1 %v168_v34 }
 0x2f8   :  { %187 = vrot.lane.b32.xlu0 %v1064_v36, %s1208_s3 }
 0x36f   :  { %v542_v43 = vpop.xlane.xlu1 %541  ;;  %v525_v44 = vpop.xlane.xlu0 %524 }
 0x370   :  { %v526_v45 = vsub.f32 %v518_v27, %v525_v44  ;;  %v543_v46 = vsub.f32 %v518_v27, %v542_v43  ;;  %v814_v43 = vld [vmem:[#allocation8 + $0x1a] ss:$0 sm:$0xff] }
 0x372   :  { %v527_v47 = vmul.f32 1.442695, %v526_v45  ;;  %v544_v51 = vmul.f32 1.442695, %v543_v46 }
 0x373   :  { %v188_v48 = vpop.permute.xlu0 %187  ;;  %v170_v54 = vpop.xlane.xlu1 %169 }
 0x374   :  { %v190_v50 = vsel %vm167_vm7, %v188_v48, 0.0  ;;  %1065 = vpow2.f32 %v527_v47  ;;  %v171_v55 = vsub.f32 %v1319_v49, %v170_v54 }
 0x375   :  { %191 = vadd.xlane.f32.xlu0 %v190_v50  ;;  %1067 = vpow2.f32 %v544_v51 }
 0x376   :  { %v172_v56 = vmul.f32 1.442695, %v171_v55 }
 0x378   :  { %1069 = vpow2.f32 %v172_v56 }
 0x37e   :  { %v1066_v52 = vpop.eup %1065 }
 0x37f   :  { %530 = vrot.lane.b32.xlu1 %v1066_v52, %s1209_s11  ;;  %v1347_v1 = vpop.eup %1067 }
 0x382   :  { %v1070_v57 = vpop.eup %1069 }
 0x383   :  { %547 = vrot.lane.b32.xlu1 %v1347_v1, %s1210_s12  ;;  %v174_v58 = vsel %vm167_vm7, %v1070_v57, 0.0 }
 0x3a7   :  { %175 = vadd.xlane.f32.xlu1 %v174_v58 }
 0x3b6   :  { %v637_v60 = vpop.f32.mrb[6].mxu0 }
 0x3b7   :  { %v638_v61 = vadd.f32 %v812_v59, %v637_v60  ;;  %v941_v62 = vpop.f32.mrb[7].mxu0 }
 0x3b9   :  { %v641_v2 = vmax.f32 %v638_v61, 0.0 }
 0x3bb   :  { %951 = vmatmul.mubr.msk.f32.vlgmr.msra.gmra.mrb[2].mxu1 %vm91_vm0, %v641_v2 }
 0x3f1   :  { %v531_v3 = vpop.permute.xlu1 %530 }
 0x3f2   :  { %v534_v4 = vsel %vm533_vm8, %v531_v3, 0.0 }
 0x3f3   :  { %535 = vadd.xlane.f32.xlu0 %v534_v4 }
 0x3f5   :  { %v548_v49 = vpop.permute.xlu1 %547 }
 0x3f6   :  { %v550_v5 = vsel %vm533_vm8, %v548_v49, 0.0 }
 0x3f7   :  { %551 = vadd.xlane.f32.xlu0 %v550_v5 }
 0x402   :  { %v192_v6 = vpop.xlane.xlu0 %191 }
 0x403   :  { %1071 = vrcp.f32 %v192_v6 }
 0x40d   :  { %v1072_v7 = vpop.eup %1071 }
 0x40e   :  { %v194_v8 = vmul.f32 %v1072_v7, %v1064_v36 }
 0x410   :  { %409 = vperm.xlu0 %1051, %v194_v8  }
 0x414   :  { %1060 = vset.pattern.permute.xlu0 %v1213_v9 }
 0x434   :  { %v176_v10 = vpop.xlane.xlu1 %175 }
 0x435   :  { %1073 = vrcp.f32 %v176_v10 }
 0x43f   :  { %v1074_v11 = vpop.eup %1073 }
 0x440   :  { %v178_v12 = vmul.f32 %v1074_v11, %v1070_v57 }
 0x442   :  { %373 = vperm.xlu1 %1050, %v178_v12  }
 0x446   :  { %1052 = vset.pattern.permute.xlu1 %v1214_v13 }
 0x447   :  { %383 = vperm.xlu1 %1052, %v178_v12  }
 0x44b   :  { %1053 = vset.pattern.permute.xlu1 %v1215_v14 }
 0x44c   :  { %419 = vperm.xlu1 %1053, %v194_v8  }
 0x450   :  { %1054 = vset.pattern.permute.xlu1 %v1216_v15 }
 0x451   :  { %393 = vperm.xlu1 %1054, %v178_v12  }
 0x455   :  { %1055 = vset.pattern.permute.xlu1 %v1217_v16 }
 0x456   :  { %429 = vperm.xlu1 %1055, %v194_v8  }
 0x45a   :  { %1056 = vset.pattern.permute.xlu1 %v1218_v17 }
 0x480   :  { %v536_v18 = vpop.xlane.xlu0 %535 }
 0x481   :  { %1075 = vrcp.f32 %v536_v18 }
 0x484   :  { %v552_v19 = vpop.xlane.xlu0 %551 }
 0x485   :  { %1077 = vrcp.f32 %v552_v19 }
 0x48b   :  { %v1076_v21 = vpop.eup %1075 }
 0x48c   :  { %v538_v22 = vmul.f32 %v1076_v21, %v1066_v52 }
 0x48e   :  { %v720_v25 = vpop.f32.mrb[2].mxu1  ;;  %731 = vperm.xlu1 %1056, %v538_v22  }
 0x48f   :  { %v410_v26 = vpop.permute.xlu0 %409  ;;  %v952_v0 = vpop.f32.mrb[3].mxu1  ;;  %v721_v44 = vadd.f32 %v814_v43, %v720_v25 }
 0x490   :  { %v1078_v27 = vpop.eup %1077  ;;  %v412_v28 = vmul.f32 %v410_v26, %v363_v23 }
 0x491   :  { %v554_v29 = vmul.f32 %v1078_v27, %v1347_v1 }
 0x492   :  { %414 = vrot.lane.b32.xlu0 %v412_v28, %s1219_s13  ;;  %1057 = vset.pattern.permute.xlu1 %v1220_v30 }
 0x493   :  { %747 = vperm.xlu1 %1057, %v554_v29  }
 0x496   :  { %726 = vperm.xlu0 %1060, %v538_v22  }
 0x497   :  { %1058 = vset.pattern.permute.xlu1 %v1221_v31 }
 0x498   :  { %368 = vperm.xlu1 %1058, %v178_v12  }
 0x49a   :  { %1062 = vset.pattern.permute.xlu0 %v1220_v30 }
 0x49c   :  { %1059 = vset.pattern.permute.xlu1 %v1222_v24 }
 0x49d   :  { %404 = vperm.xlu1 %1059, %v194_v8  }
 0x4a1   :  { %1061 = vset.pattern.permute.xlu1 %v1223_v32 }
 0x4c1   :  { %v374_v33 = vpop.permute.xlu1 %373 }
 0x4c2   :  { %v376_v34 = vmul.f32 %v374_v33, %v363_v23 }
 0x4c4   :  { %378 = vrot.lane.b32.xlu1 %v376_v34, %s1219_s13 }
 0x4c6   :  { %v384_v35 = vpop.permute.xlu1 %383 }
 0x4c7   :  { %v386_v36 = vmul.f32 %v384_v35, %v363_v23 }
 0x4c8   :  { %742 = vperm.xlu1 %1061, %v554_v29  }
 0x4cb   :  { %v420_v37 = vpop.permute.xlu1 %419 }
 0x4cc   :  { %v422_v38 = vmul.f32 %v420_v37, %v363_v23  ;;  %388 = vrot.lane.b32.xlu1 %v386_v36, %s1224_s14 }
 0x4ce   :  { %424 = vrot.lane.b32.xlu0 %v422_v38, %s1224_s14 }
 0x4d0   :  { %v394_v39 = vpop.permute.xlu1 %393 }
 0x4d1   :  { %v396_v40 = vmul.f32 %v394_v39, %v363_v23 }
 0x4d3   :  { %398 = vrot.lane.b32.xlu1 %v396_v40, %s1225_s15 }
 0x4d5   :  { %v430_v41 = vpop.permute.xlu1 %429 }
 0x4d6   :  { %v432_v42 = vmul.f32 %v430_v41, %v363_v23 }
 0x4d8   :  { %434 = vrot.lane.b32.xlu0 %v432_v42, %s1225_s15 }
 0x504   :  { %v415_v53 = vpop.permute.xlu0 %414 }
 0x50d   :  { %v732_v45 = vpop.permute.xlu1 %731 }
 0x50e   :  { %v734_v46 = vmul.f32 %v732_v45, %v721_v44 }
 0x510   :  { %736 = vrot.lane.b32.xlu1 %v734_v46, %s1219_s13 }
 0x512   :  { %v748_v47 = vpop.permute.xlu1 %747 }
 0x513   :  { %v750_v48 = vmul.f32 %v748_v47, %v721_v44 }
 0x515   :  { %752 = vrot.lane.b32.xlu0 %v750_v48, %s1219_s13  ;;  %v727_v55 = vpop.permute.xlu0 %726 }
 0x516   :  { %v729_v61 = vmul.f32 %v727_v55, %v721_v44 }
 0x517   :  { %v369_v50 = vpop.permute.xlu1 %368 }
 0x518   :  { %v371_v56 = vmul.f32 %v369_v50, %v363_v23 }
 0x51c   :  { %v405_v51 = vpop.permute.xlu1 %404 }
 0x51d   :  { %v407_v60 = vmul.f32 %v405_v51, %v363_v23 }
 0x51f   :  { %v417_v49 = vadd.f32 %v415_v53, %v407_v60 }
 0x536   :  { %v379_v52 = vpop.permute.xlu1 %378 }
 0x537   :  { %v381_v58 = vadd.f32 %v379_v52, %v371_v56 }
 0x540   :  { %v425_v59 = vpop.permute.xlu0 %424 }
 0x541   :  { %v427_v6 = vadd.f32 %v425_v59, %v417_v49 }
 0x547   :  { %v743_v1 = vpop.permute.xlu1 %742 }
 0x548   :  { %v745_v7 = vmul.f32 %v743_v1, %v721_v44 }
 0x54a   :  { %v435_v2 = vpop.permute.xlu0 %434 }
 0x54b   :  { %v389_v54 = vpop.permute.xlu1 %388  ;;  %v437_v10 = vadd.f32 %v435_v2, %v427_v6 }
 0x54c   :  { %v391_v62 = vadd.f32 %v389_v54, %v381_v58 }
 0x54f   :  { %v399_v57 = vpop.permute.xlu1 %398 }
 0x550   :  { %v401_v3 = vadd.f32 %v399_v57, %v391_v62 }
 0x582   :  { %v737_v63 = vpop.permute.xlu1 %736 }
 0x583   :  { %v739_v4 = vadd.f32 %v737_v63, %v729_v61 }
 0x585   :  { %v756_v5 = vmul.f32 %v739_v4, %v401_v3 }
 0x587   :  { %v753_v8 = vpop.permute.xlu0 %752  ;;  %v758_v9 = vsel %vm757_vm9, %v756_v5, 0.0 }
 0x588   :  { %v755_v11 = vadd.f32 %v753_v8, %v745_v7  ;;  %759 = vadd.xlane.f32.xlu1 %v758_v9 }
 0x58a   :  { %v761_v12 = vmul.f32 %v755_v11, %v437_v10 }
 0x58c   :  { %v762_v13 = vsel %vm757_vm9, %v761_v12, 0.0 }
 0x58d   :  { %763 = vadd.xlane.f32.xlu0 %v762_v13 }
 0x599   :  { %772 = vrot.lane.b32.xlu1 %v739_v4, %s1226_s16 }
 0x59d   :  { %776 = vrot.lane.b32.xlu1 %v755_v11, %s1227_s17 }
 0x5a3   :  { %768 = vrot.lane.b32.xlu0 %v437_v10, %s1201_s18 }
 0x615   :  { %v760_v14 = vpop.xlane.xlu1 %759 }
 0x619   :  { %v773_v18 = vpop.permute.xlu1 %772 }
 0x61a   :  { %v764_v15 = vpop.xlane.xlu0 %763 }
 0x61b   :  { %v766_v16 = vsel %vm765_vm10, %v760_v14, %v764_v15 }
 0x61c   :  { %780 = vrot.lane.b32.xlu0 %v766_v16, %s1209_s11 }
 0x61d   :  { %v777_v21 = vpop.permute.xlu1 %776 }
 0x61e   :  { %v769_v17 = vpop.permute.xlu0 %768 }
 0x61f   :  { %v783_v19 = vsel %vm757_vm9, %v401_v3, %v769_v17 }
 0x620   :  { %v784_v20 = vsel %vm91_vm0, %v783_v19, %v773_v18 }
 0x621   :  { %v786_v23 = vsel %vm785_vm11, %v784_v20, %v777_v21 }
 0x68e   :  { %v781_v22 = vpop.permute.xlu0 %780 }
 0x68f   :  { %v787_v25 = vsel %vm292_vm3, %v786_v23, %v781_v22 }
 0x690   :  { %v789_v26 = vsel %vm788_vm12, %v787_v25, 0.0 }
 0x691   :  { %790 = vst [vmem:[#allocation10] sm:$0xff] %v789_v26 }
 0x692   :  { %1178 = shalt.err (!%p1175_p8)
}
 0x693   :  { %s1179_s18 = scalar_lea.hbm %s1382_s4, 128 }
 0x694   :  { %p1180_p9 = scmp.ne.s32.totalorder %s1382_s4, %s1179_s18  ;;  %p1183_p10 = scmp.lt.u32.totalorder %s1179_s18, %s1382_s4 }
 0x696   :  { %p1185_p11 = pnand %p1183_p10, %p1180_p9 }
 0x698   :  { %1188 = shalt.err (!%p1185_p11)
}
 0x699   :  { %800 = dma.vmem_to_hbm [thread:$0]  %s798_s20, 128, %s1382_s4, [#allocation4]  }
 0x69a   :  { %1195 = dma.done.wait [#allocation4], 128  }
 0x69b   :  { %1196 = vsyncadd [#allocation4], 4294967168 }
 0x69c   :  { %804 = vsyncpa [#allocation3], 1 }
 0x69d   :  { %805 = vsyncpa [#allocation6], 1 }
 0x69e   :  { %806 = vsyncpa [#allocation9], 1 }
 0x69f   :  { %807 = vsyncpa [#allocation4], 1 }

</bundles_post_ra>
